<compile_context>
chip_gen: v7x
topology: tpu7x:2x2x1
jax: 0.10.0
libtpu: 0.0.40
codegen_flags: <defaults>
</compile_context>

<pallas_src>
import math

import jax
import jax.numpy as jnp
from jax.experimental import pallas as pl
from jax.experimental.pallas import tpu as pltpu


_INV_SQRT2 = 1.0 / math.sqrt(2.0)


def _gelu_f32(h):
    # Exact (erf) GELU in f32, matching torch.nn.GELU() default (approximate='none').
    return 0.5 * h * (1.0 + jax.lax.erf(h * jnp.float32(_INV_SQRT2)))


# --------------------------------------------------------------------------- #
# Kernels
# --------------------------------------------------------------------------- #
def _linear_head_kernel_fused(x_ref, w1_ref, b1_ref, w2_ref, b2_ref, o_ref,
                              h_ref):
    """2-D grid (batch tile i, D_out tile j).

    The whole D_in reduction is a single MXU call because the x / w1 blocks
    span the full (padded) D_in.  gelu(h) is computed once per batch tile
    (j == 0), cached in h_ref, and reused by every other D_out tile.
    """
    j = pl.program_id(1)

    @pl.when(j == 0)
    def _first_linear_gelu():
        h = jnp.dot(x_ref[...], w1_ref[...], preferred_element_type=jnp.float32)
        h = _gelu_f32(h + b1_ref[...].astype(jnp.float32))
        # Cast back to the activation dtype so the second matmul stays on the
        # fast MXU path and the [tb, H] intermediate is not kept in f32.
        h_ref[...] = h.astype(h_ref.dtype)

    out = jnp.dot(h_ref[...], w2_ref[...], preferred_element_type=jnp.float32)
    out = out + b2_ref[...].astype(jnp.float32)
    o_ref[...] = out.astype(o_ref.dtype)


def _linear_head_kernel_ksplit(x_ref, w1_ref, b1_ref, w2_ref, b2_ref, o_ref,
                               acc_ref, h_ref):
    """3-D grid (batch tile i, D_out tile j, D_in tile k) for large D_in.

    The D_in reduction (f32 accumulator) only runs on the first D_out tile;
    the gelu'd result is cached in h_ref and reused for every other D_out
    tile of the same batch tile.  The wrapper freezes the x / w1 index maps
    for j > 0 so those steps do not re-stream anything from HBM.
    """
    j = pl.program_id(1)
    k = pl.program_id(2)
    nk = pl.num_programs(2)

    @pl.when((j == 0) & (k == 0))
    def _init():
        acc_ref[...] = jnp.zeros_like(acc_ref)

    @pl.when(j == 0)
    def _accumulate():
        acc_ref[...] += jnp.dot(x_ref[...], w1_ref[...],
                                preferred_element_type=jnp.float32)

    @pl.when((j == 0) & (k == nk - 1))
    def _bias_gelu():
        h = _gelu_f32(acc_ref[...] + b1_ref[...].astype(jnp.float32))
        h_ref[...] = h.astype(h_ref.dtype)

    @pl.when(k == nk - 1)
    def _second_matmul():
        out = jnp.dot(h_ref[...], w2_ref[...], preferred_element_type=jnp.float32)
        out = out + b2_ref[...].astype(jnp.float32)
        o_ref[...] = out.astype(o_ref.dtype)


# --------------------------------------------------------------------------- #
# Helpers
# --------------------------------------------------------------------------- #
def _round_up(n, m):
    return ((n + m - 1) // m) * m


def _pad2(a, rows, cols):
    pr, pc = rows - a.shape[0], cols - a.shape[1]
    if pr == 0 and pc == 0:
        return a
    return jnp.pad(a, ((0, pr), (0, pc)))


def _choose_tile(dim, target, align):
    """Largest multiple of `align` that divides `dim` and is <= max(target, align).

    Assumes dim % align == 0 (the wrapper pads all dims first).
    """
    assert dim % align == 0
    if dim <= target:
        return dim
    t = max(align, (target // align) * align)
    while t > align and dim % t != 0:
        t -= align
    return t


def _vmem_capacity_bytes():
    try:
        cap = int(getattr(pltpu.get_tpu_info(), "vmem_capacity_bytes"))
        if cap > 0:
            return cap
    except Exception:
        pass
    return 64 * 1024 * 1024  # conservative default (v7x per-core VMEM)


# --------------------------------------------------------------------------- #
# Wrapper
# --------------------------------------------------------------------------- #
def linear_head_forward(x, w1, b1, w2, b2, *,
                        batch_tile=None, n_tile=None, k_tile=None):
    """Fused LinearHead forward.

    x : [B, D_in]
    w1: [D_in, H],  b1: [1, H]        (H = D_in // 2 for the torch module)
    w2: [H, D_out], b2: [1, D_out]
    returns [B, D_out] in x.dtype
    """
    B, D_in = x.shape
    H = w1.shape[1]
    D_out = w2.shape[1]

    act_dt = x.dtype
    act_isz = jnp.dtype(act_dt).itemsize
    par_isz = jnp.dtype(w1.dtype).itemsize
    sublane = 16 if act_isz == 2 else 8

    # ---- pad to hardware-friendly sizes (lane = 128, sublane = 8/16) -------
    # Zero padding is exact: gelu(0) == 0 and zero rows/cols contribute
    # nothing; padded output rows/cols are sliced off at the end.
    B_p = _round_up(B, sublane)
    D_in_p = _round_up(D_in, 128)
    H_p = _round_up(H, 128)
    D_out_p = _round_up(D_out, 128)

    x_p = _pad2(x, B_p, D_in_p)
    w1_p = _pad2(w1, D_in_p, H_p)
    b1_p = _pad2(b1, 1, H_p)
    w2_p = _pad2(w2, H_p, D_out_p)
    b2_p = _pad2(b2, 1, D_out_p)

    # ---- generation-aware VMEM budget ---------------------------------------
    vmem_cap = _vmem_capacity_bytes()           # 128 MiB on v5e/v6e, 64 MiB on v7x
    small_vmem = vmem_cap <= 80 * 1024 * 1024   # v7x-like
    budget = int(0.80 * vmem_cap) - (2 << 20)   # headroom for Mosaic internals

    # ---- tile selection ------------------------------------------------------
    auto_bt = batch_tile is None
    auto_nt = n_tile is None
    auto_kt = k_tile is None
    if auto_bt:
        # Bigger batch tiles on 128-MiB parts stream the weights fewer times;
        # on v7x keep >= 2 batch tiles so both TensorCores get work (only the
        # batch axis is megacore-parallel).
        batch_tile = _choose_tile(B_p, 256 if small_vmem else 512, sublane)
        if small_vmem and B_p // batch_tile < 2 and B_p >= 2 * sublane:
            batch_tile = _choose_tile(B_p, B_p // 2, sublane)
    if auto_nt:
        n_tile = _choose_tile(D_out_p, 256, 128)
    if auto_kt:
        k_tile = D_in_p      # prefer a fully VMEM-resident first layer (no k axis)

    def _footprint(bt, kt, nt):
        # Honest per-step footprint: inputs/outputs double-buffered (counted
        # once), plus the f32 accumulator and the cached gelu(h) scratch.
        return (2 * bt * kt * act_isz          # x tile
                + 2 * kt * H_p * par_isz       # w1 tile
                + 2 * H_p * par_isz            # b1
                + 2 * H_p * nt * par_isz       # w2 tile
                + 2 * nt * par_isz             # b2
                + 2 * bt * nt * act_isz        # out tile
                + bt * H_p * 4                 # f32 accumulator (k-split path)
                + bt * H_p * act_isz)          # cached gelu(h)

    for _ in range(32):                        # shrink auto-selected tiles to fit
        if _footprint(batch_tile, k_tile, n_tile) <= budget:
            break
        if auto_kt and k_tile > 1024:
            k_tile = _choose_tile(D_in_p, k_tile // 2, 128); continue
        if auto_bt and batch_tile > max(64, sublane):
            batch_tile = _choose_tile(B_p, batch_tile // 2, sublane); continue
        if auto_nt and n_tile > 128:
            n_tile = _choose_tile(D_out_p, n_tile // 2, 128); continue
        if auto_kt and k_tile > 128:
            k_tile = _choose_tile(D_in_p, k_tile // 2, 128); continue
        break

    assert B_p % batch_tile == 0 and D_out_p % n_tile == 0 and D_in_p % k_tile == 0
    nbi, nj, nk = B_p // batch_tile, D_out_p // n_tile, D_in_p // k_tile

    vmem_limit = int(min(0.85 * vmem_cap,
                         max(32 * 1024 * 1024,
                             1.25 * _footprint(batch_tile, k_tile, n_tile)
                             + (2 << 20))))

    cost = pl.CostEstimate(
        flops=2 * B_p * D_in_p * H_p + 2 * B_p * H_p * D_out_p,
        transcendentals=B_p * H_p,
        bytes_accessed=(x_p.size * act_isz + w1_p.size * par_isz
                        + b1_p.size * par_isz + w2_p.size * par_isz
                        + b2_p.size * par_isz + B_p * D_out_p * act_isz),
    )
    out_shape = jax.ShapeDtypeStruct((B_p, D_out_p), act_dt)

    if nk == 1:
        # ---- 2-D grid: x streamed once per batch tile, w1/b1 DMA'd once -----
        grid_spec = pltpu.PrefetchScalarGridSpec(
            num_scalar_prefetch=0,
            grid=(nbi, nj),
            in_specs=[
                pl.BlockSpec((batch_tile, D_in_p), lambda i, j: (i, 0)),
                pl.BlockSpec((D_in_p, H_p), lambda i, j: (0, 0)),
                pl.BlockSpec((1, H_p), lambda i, j: (0, 0)),
                pl.BlockSpec((H_p, n_tile), lambda i, j: (0, j)),
                pl.BlockSpec((1, n_tile), lambda i, j: (0, j)),
            ],
            out_specs=pl.BlockSpec((batch_tile, n_tile), lambda i, j: (i, j)),
            scratch_shapes=[pltpu.VMEM((batch_tile, H_p), act_dt)],  # cached gelu(h)
        )
        kernel = _linear_head_kernel_fused
        dim_sem = ("parallel", "arbitrary")
    else:
        # ---- 3-D k-split fallback with frozen x/w1 index maps for j > 0 -----
        def _k_or_frozen(j, k):
            # Real reduction walk only on the first D_out tile; for j > 0 the
            # block index is pinned at nk-1 so Pallas sees an unchanged index
            # and skips the x / w1 re-DMA entirely.
            return jnp.where(j == 0, k, nk - 1)

        grid_spec = pltpu.PrefetchScalarGridSpec(
            num_scalar_prefetch=0,
            grid=(nbi, nj, nk),
            in_specs=[
                pl.BlockSpec((batch_tile, k_tile),
                             lambda i, j, k: (i, _k_or_frozen(j, k))),
                pl.BlockSpec((k_tile, H_p),
                             lambda i, j, k: (_k_or_frozen(j, k), 0)),
                pl.BlockSpec((1, H_p), lambda i, j, k: (0, 0)),
                pl.BlockSpec((H_p, n_tile), lambda i, j, k: (0, j)),
                pl.BlockSpec((1, n_tile), lambda i, j, k: (0, j)),
            ],
            out_specs=pl.BlockSpec((batch_tile, n_tile), lambda i, j, k: (i, j)),
            scratch_shapes=[pltpu.VMEM((batch_tile, H_p), jnp.float32),  # acc
                            pltpu.VMEM((batch_tile, H_p), act_dt)],      # gelu(h)
        )
        kernel = _linear_head_kernel_ksplit
        dim_sem = ("parallel", "arbitrary", "arbitrary")

    out_p = pl.pallas_call(
        kernel,
        out_shape=out_shape,
        grid_spec=grid_spec,
        compiler_params=pltpu.CompilerParams(
            dimension_semantics=dim_sem,
            vmem_limit_bytes=vmem_limit,
        ),
        cost_estimate=cost,
    )(x_p, w1_p, b1_p, w2_p, b2_p)

    if B_p != B or D_out_p != D_out:
        out_p = out_p[:B, :D_out]
    return out_p


# --------------------------------------------------------------------------- #
# Parameter init + reference
# --------------------------------------------------------------------------- #
def init_linear_head_params(key, input_size, output_size, dtype=jnp.float32):
    """Deterministic init mimicking torch.nn.Linear's U(-1/sqrt(fan_in), 1/sqrt(fan_in))."""
    hidden = input_size // 2
    k1, k2, k3, k4 = jax.random.split(key, 4)

    bound1 = 1.0 / math.sqrt(input_size)
    w1 = jax.random.uniform(k1, (input_size, hidden), dtype,
                            minval=-bound1, maxval=bound1)
    b1 = jax.random.uniform(k2, (1, hidden), dtype,
                            minval=-bound1, maxval=bound1)

    bound2 = 1.0 / math.sqrt(hidden)
    w2 = jax.random.uniform(k3, (hidden, output_size), dtype,
                            minval=-bound2, maxval=bound2)
    b2 = jax.random.uniform(k4, (1, output_size), dtype,
                            minval=-bound2, maxval=bound2)
    return w1, b1, w2, b2


def _reference_forward(x, w1, b1, w2, b2):
    # Mirrors the kernel's dtype flow: native-dtype matmuls with f32 accum,
    # f32 bias + exact GELU, cast back to activation dtype between matmuls.
    h = jnp.dot(x, w1, preferred_element_type=jnp.float32) + b1.astype(jnp.float32)
    h = _gelu_f32(h)
    h = h.astype(x.dtype)
    out = jnp.dot(h, w2, preferred_element_type=jnp.float32) + b2.astype(jnp.float32)
    return out.astype(x.dtype)


if __name__ == "__main__":
    key = jax.random.PRNGKey(0)
    kx1, kp1, kx2, kp2, kx3, kp3 = jax.random.split(key, 6)

    # --- 1) tiny f32 case: exercises the lane/sublane zero-padding path ------
    B, D_in, D_out = 8, 32, 8
    x = jax.random.normal(kx1, (B, D_in), jnp.float32)
    w1, b1, w2, b2 = init_linear_head_params(kp1, D_in, D_out, jnp.float32)
    out = jax.block_until_ready(linear_head_forward(x, w1, b1, w2, b2))
    ref = _reference_forward(x, w1, b1, w2, b2)
    assert out.shape == (B, D_out)
    assert jnp.allclose(out, ref, atol=1e-5, rtol=1e-5), "f32 mismatch vs reference"

    # --- 2) bf16 case on the fused 2-D-grid path (w1 fully VMEM-resident) ----
    B2, D_in2, D_out2 = 512, 1024, 512
    x2 = jax.random.normal(kx2, (B2, D_in2), jnp.float32).astype(jnp.bfloat16)
    w1b, b1b, w2b, b2b = init_linear_head_params(kp2, D_in2, D_out2, jnp.bfloat16)
    out2 = jax.block_until_ready(linear_head_forward(x2, w1b, b1b, w2b, b2b))
    ref2 = _reference_forward(x2, w1b, b1b, w2b, b2b)
    assert out2.shape == (B2, D_out2)
    err2 = jnp.max(jnp.abs(out2.astype(jnp.float32) - ref2.astype(jnp.float32)))
    assert err2 < 5e-2, f"bf16 mismatch vs reference: {err2}"

    # --- 3) forced k-split path (frozen x/w1 index maps for j > 0 tiles) -----
    B3, D_in3, D_out3 = 64, 512, 256
    x3 = jax.random.normal(kx3, (B3, D_in3), jnp.float32).astype(jnp.bfloat16)
    w1c, b1c, w2c, b2c = init_linear_head_params(kp3, D_in3, D_out3, jnp.bfloat16)
    out3 = jax.block_until_ready(
        linear_head_forward(x3, w1c, b1c, w2c, b2c, n_tile=128, k_tile=256))
    ref3 = _reference_forward(x3, w1c, b1c, w2c, b2c)
    assert out3.shape == (B3, D_out3)
    err3 = jnp.max(jnp.abs(out3.astype(jnp.float32) - ref3.astype(jnp.float32)))
    assert err3 < 5e-2, f"bf16 k-split mismatch vs reference: {err3}"

    print("KERNEL_OK")
</pallas_src>

<mosaic_0001>
module attributes {stable_mosaic.version = 11 : i64} {
  func.func @_linear_head_kernel_fused(%arg0: i32, %arg1: i32, %arg2: memref<8x128xf32, #tpu.memory_space<vmem>>, %arg3: memref<128x128xf32, #tpu.memory_space<vmem>>, %arg4: memref<1x128xf32, #tpu.memory_space<vmem>>, %arg5: memref<128x128xf32, #tpu.memory_space<vmem>>, %arg6: memref<1x128xf32, #tpu.memory_space<vmem>>, %arg7: memref<8x128xf32, #tpu.memory_space<vmem>>, %arg8: memref<8x128xf32, #tpu.memory_space<vmem>>) attributes {dimension_semantics = [#tpu.dimension_semantics<parallel>, #tpu.dimension_semantics<arbitrary>], iteration_bounds = array<i64: 1, 1>, scalar_prefetch = 0 : i64, scratch_operands = 1 : i64, tpu.core_type = #tpu.core_type<tc>, window_params = [{transform_indices = @transform_0, window_bounds = array<i64: 8, 128>}, {pipeline_mode = #tpu.pipeline_mode<synchronous>, transform_indices = @transform_1, window_bounds = array<i64: 128, 128>}, {pipeline_mode = #tpu.pipeline_mode<synchronous>, transform_indices = @transform_2, window_bounds = array<i64: 1, 128>}, {transform_indices = @transform_3, window_bounds = array<i64: 128, 128>}, {transform_indices = @transform_4, window_bounds = array<i64: 1, 128>}, {transform_indices = @transform_5, window_bounds = array<i64: 8, 128>}]} {
    %c0_i32 = arith.constant 0 : i32
    %0 = arith.cmpi eq, %arg1, %c0_i32 : i32
    %1 = arith.extui %0 : i1 to i32
    %c0_i32_0 = arith.constant 0 : i32
    %2 = arith.cmpi ne, %1, %c0_i32_0 : i32
    scf.if %2 {
      %c0_8 = arith.constant 0 : index
      %c0_9 = arith.constant 0 : index
      %10 = vector.load %arg2[%c0_8, %c0_9] : memref<8x128xf32, #tpu.memory_space<vmem>>, vector<8x128xf32>
      %c0_10 = arith.constant 0 : index
      %c0_11 = arith.constant 0 : index
      %11 = vector.load %arg3[%c0_10, %c0_11] : memref<128x128xf32, #tpu.memory_space<vmem>>, vector<128x128xf32>
      %cst_12 = arith.constant dense<0.000000e+00> : vector<8x128xf32>
      %12 = tpu.matmul %10, %11, %cst_12 {dimension_numbers = #tpu.dot_dimension_numbers<[1], [0], [0], [1], [0, 0, 1, 1], [], []>} : vector<8x128xf32>, vector<128x128xf32>, vector<8x128xf32> -> vector<8x128xf32>
      %c0_13 = arith.constant 0 : index
      %c0_14 = arith.constant 0 : index
      %13 = vector.load %arg4[%c0_13, %c0_14] : memref<1x128xf32, #tpu.memory_space<vmem>>, vector<1x128xf32>
      %14 = vector.broadcast %13 : vector<1x128xf32> to vector<8x128xf32>
      %15 = arith.addf %12, %14 : vector<8x128xf32>
      %cst_15 = arith.constant 5.000000e-01 : f32
      %16 = vector.broadcast %cst_15 : f32 to vector<8x128xf32>
      %17 = arith.mulf %16, %15 : vector<8x128xf32>
      %cst_16 = arith.constant 0.707106769 : f32
      %18 = vector.broadcast %cst_16 : f32 to vector<8x128xf32>
      %19 = arith.mulf %15, %18 : vector<8x128xf32>
      %20 = math.erf %19 : vector<8x128xf32>
      %cst_17 = arith.constant 1.000000e+00 : f32
      %21 = vector.broadcast %cst_17 : f32 to vector<8x128xf32>
      %22 = arith.addf %21, %20 : vector<8x128xf32>
      %23 = arith.mulf %17, %22 : vector<8x128xf32>
      %c0_18 = arith.constant 0 : index
      %c0_19 = arith.constant 0 : index
      %24 = vector.load %arg8[%c0_18, %c0_19] : memref<8x128xf32, #tpu.memory_space<vmem>>, vector<8x128xf32>
      tpu.vector_store %arg8[%c0_18, %c0_19], %23 {strides = array<i32>} : memref<8x128xf32, #tpu.memory_space<vmem>>, vector<8x128xf32>,
    } else {
    }
    %c0 = arith.constant 0 : index
    %c0_1 = arith.constant 0 : index
    %3 = vector.load %arg8[%c0, %c0_1] : memref<8x128xf32, #tpu.memory_space<vmem>>, vector<8x128xf32>
    %c0_2 = arith.constant 0 : index
    %c0_3 = arith.constant 0 : index
    %4 = vector.load %arg5[%c0_2, %c0_3] : memref<128x128xf32, #tpu.memory_space<vmem>>, vector<128x128xf32>
    %cst = arith.constant dense<0.000000e+00> : vector<8x128xf32>
    %5 = tpu.matmul %3, %4, %cst {dimension_numbers = #tpu.dot_dimension_numbers<[1], [0], [0], [1], [0, 0, 1, 1], [], []>} : vector<8x128xf32>, vector<128x128xf32>, vector<8x128xf32> -> vector<8x128xf32>
    %c0_4 = arith.constant 0 : index
    %c0_5 = arith.constant 0 : index
    %6 = vector.load %arg6[%c0_4, %c0_5] : memref<1x128xf32, #tpu.memory_space<vmem>>, vector<1x128xf32>
    %7 = vector.broadcast %6 : vector<1x128xf32> to vector<8x128xf32>
    %8 = arith.addf %5, %7 : vector<8x128xf32>
    %c0_6 = arith.constant 0 : index
    %c0_7 = arith.constant 0 : index
    %9 = vector.load %arg7[%c0_6, %c0_7] : memref<8x128xf32, #tpu.memory_space<vmem>>, vector<8x128xf32>
    tpu.vector_store %arg7[%c0_6, %c0_7], %8 {strides = array<i32>} : memref<8x128xf32, #tpu.memory_space<vmem>>, vector<8x128xf32>,
    return
  }
  func.func @transform_0(%arg0: i32, %arg1: i32) -> (i32, i32) {
    %c0_i32 = arith.constant 0 : i32
    %c0_i32_0 = arith.constant 0 : i32
    return %arg0, %c0_i32 : i32, i32
  }
  func.func @transform_1(%arg0: i32, %arg1: i32) -> (i32, i32) {
    %c0_i32 = arith.constant 0 : i32
    %c0_i32_0 = arith.constant 0 : i32
    %c0_i32_1 = arith.constant 0 : i32
    return %c0_i32, %c0_i32_0 : i32, i32
  }
  func.func @transform_2(%arg0: i32, %arg1: i32) -> (i32, i32) {
    %c0_i32 = arith.constant 0 : i32
    %c0_i32_0 = arith.constant 0 : i32
    %c0_i32_1 = arith.constant 0 : i32
    return %c0_i32, %c0_i32_0 : i32, i32
  }
  func.func @transform_3(%arg0: i32, %arg1: i32) -> (i32, i32) {
    %c0_i32 = arith.constant 0 : i32
    %c0_i32_0 = arith.constant 0 : i32
    return %c0_i32, %arg1 : i32, i32
  }
  func.func @transform_4(%arg0: i32, %arg1: i32) -> (i32, i32) {
    %c0_i32 = arith.constant 0 : i32
    %c0_i32_0 = arith.constant 0 : i32
    return %c0_i32, %arg1 : i32, i32
  }
  func.func @transform_5(%arg0: i32, %arg1: i32) -> (i32, i32) {
    %c0_i32 = arith.constant 0 : i32
    return %arg0, %arg1 : i32, i32
  }
}

</mosaic_0001>

<bundles_post_ra>
// kernel: tpu_custom_call.1
= control target key start
LH: loop header
LB: loop body
LE: loop exit
PB: predicated region body
PF: predicated region fallthrough
CT: control target
= control target key end

     0   :  { %10 = vsyncpa [#allocation4], 0  ;;  %s649_s0 = inlined_call_operand.hbm [shape: f32[8,128], index: 0, kind: input, shape index: {}]   ;;  %s650_s1 = inlined_call_operand.hbm [shape: f32[128,128], index: 1, kind: input, shape index: {}]   ;;  %s651_s2 = inlined_call_operand.vmem [shape: f32[1,128], index: 2, kind: input, shape index: {}]   ;;  %s652_s3 = inlined_call_operand.hbm [shape: f32[128,128], index: 3, kind: input, shape index: {}]   ;;  %s653_s4 = inlined_call_operand.vmem [shape: f32[1,128], index: 4, kind: input, shape index: {}]   ;;  %s654_s5 = inlined_call_operand.hbm [shape: f32[8,128], index: 5, kind: output, shape index: {}]  }
   0x1   :  { %11 = vsyncpa [#allocation7], 0 }
   0x2   :  { %12 = vsyncpa [#allocation5], 0  ;;  %s534_s18 = smov [#allocation6]   ;;  %s440_s22 = scalar_lea.hbm %s650_s1, 2048 }
   0x3   :  { %s28_s19 = sshll.u32 %s534_s18, 4  ;;  %p441_p0 = scmp.ne.s32.totalorder %s650_s1, %s440_s22  ;;  %s29_s19 = int_to_ptr.vmem [resolvable:$true] %s28_s19 }
   0x4   :  { %p444_p1 = scmp.lt.u32.totalorder %s440_s22, %s650_s1 }
   0x6   :  { %p446_p2 = pnand %p444_p1, %p441_p0 }
   0x8   :  { %449 = shalt.err (!%p446_p2)
}
   0x9   :  { %s450_s27 = scalar_lea.vmem %s29_s19, 2048  ;;  %p455_p4 = scmp.lt.s32.totalorder %s29_s19, %s29_s19 }
   0xa   :  { %p451_p3 = scmp.ne.s32.totalorder %s29_s19, %s450_s27  ;;  %p456_p5 = scmp.lt.s32.totalorder %s450_s27, %s450_s27 }
   0xc   :  { %p457_p6 = por %p456_p5, %p455_p4 }
   0xe   :  { %p458_p7 = pnand %p457_p6, %p451_p3 }
  0x10   :  { %461 = shalt.err (!%p458_p7)
}
  0x11   :  { %s535_s28 = smov 128   ;;  %s536_s29 = smov 8  }
  0x12   :  { %34 = dma.hbm_to_vmem [thread:$0]  %s650_s1, 2048, %s29_s19, [#allocation7], %s535_s28, %s535_s28, %s536_s29  }
  0x13   :  { %s537_s7 = smov [#allocation3]   ;;  %s538_s9 = smov [#allocation8]  }
  0x14   :  { %s19_s8 = sshll.u32 %s537_s7, 4  ;;  %s42_s10 = sshll.u32 %s538_s9, 4  ;;  %s20_s8 = int_to_ptr.vmem [resolvable:$true] %s19_s8  ;;  %s43_s10 = int_to_ptr.vmem [resolvable:$true] %s42_s10 }
  0x15   :  { %s462_s13 = scalar_lea.hbm %s649_s0, 128 }
  0x16   :  { %p463_p8 = scmp.ne.s32.totalorder %s649_s0, %s462_s13  ;;  %p466_p9 = scmp.lt.u32.totalorder %s462_s13, %s649_s0 }
  0x18   :  { %p468_p10 = pnand %p466_p9, %p463_p8 }
  0x1a   :  { %471 = shalt.err (!%p468_p10)
}
  0x1b   :  { %s472_s1 = scalar_lea.vmem %s20_s8, 128  ;;  %p477_p12 = scmp.lt.s32.totalorder %s20_s8, %s20_s8 }
  0x1c   :  { %p473_p11 = scmp.ne.s32.totalorder %s20_s8, %s472_s1  ;;  %p478_p13 = scmp.lt.s32.totalorder %s472_s1, %s472_s1 }
  0x1e   :  { %p479_p0 = por %p478_p13, %p477_p12 }
  0x20   :  { %p480_p1 = pnand %p479_p0, %p473_p11 }
  0x22   :  { %483 = shalt.err (!%p480_p1)
}
  0x23   :  { %22 = dma.hbm_to_vmem [thread:$0]  %s649_s0, 128, %s20_s8, [#allocation4]  }
  0x24   :  { %s484_s22 = scalar_lea.hbm %s652_s3, 2048 }
  0x25   :  { %p485_p2 = scmp.ne.s32.totalorder %s652_s3, %s484_s22  ;;  %p488_p3 = scmp.lt.u32.totalorder %s484_s22, %s652_s3 }
  0x27   :  { %p490_p4 = pnand %p488_p3, %p485_p2 }
  0x29   :  { %493 = shalt.err (!%p490_p4)
}
  0x2a   :  { %s494_s27 = scalar_lea.vmem %s43_s10, 2048  ;;  %p499_p6 = scmp.lt.s32.totalorder %s43_s10, %s43_s10 }
  0x2b   :  { %p495_p5 = scmp.ne.s32.totalorder %s43_s10, %s494_s27  ;;  %p500_p7 = scmp.lt.s32.totalorder %s494_s27, %s494_s27 }
  0x2d   :  { %p501_p8 = por %p500_p7, %p499_p6 }
  0x2f   :  { %p502_p9 = pnand %p501_p8, %p495_p5 }
  0x31   :  { %505 = shalt.err (!%p502_p9)
}
  0x32   :  { %48 = dma.hbm_to_vmem [thread:$0]  %s652_s3, 2048, %s43_s10, [#allocation7], %s535_s28, %s535_s28, %s536_s29  }
  0x33   :  { %528 = dma.done.wait [#allocation4], 128  }
  0x34   :  { %529 = vsyncadd [#allocation4], 4294967168 }
  0x35   :  { %530 = dma.done.wait [#allocation7], 4096  }
  0x36   :  { %531 = vsyncadd [#allocation7], 4294963200  ;;  %v539_v0 = vmov 0.0|0.0   ;;  %vm540_vm0 = vmmov 0   ;;  %v541_v1 = vmov 0.0   ;;  %v65_v2 = vld [vmem:[#allocation6] sm:$0xff] }
  0x37   :  { %381 = vmatprep.subr.bf16.mxu0 %v539_v0  ;;  %343 = vmatprep.mubr.msk.f32.mxu0 %vm540_vm0, %v541_v1  ;;  %v66_v3 = vld [vmem:[#allocation6 + $0x8] sm:$0xff]  ;;  %v67_v4 = vld [vmem:[#allocation6 + $0x10] sm:$0xff]  ;;  %v68_v6 = vld [vmem:[#allocation6 + $0x18] sm:$0xff]  ;;  %s542_s7 = smov [#allocation9]  }
  0x38   :  { %405 = vmatprep.subr.bf16.mxu1 %v539_v0  ;;  %378 = vmatprep.mubr.msk.f32.mxu1 %vm540_vm0, %v541_v1  ;;  %v382_v5 = vpack.c.bf16 %v66_v3, %v65_v2  ;;  %v385_v7 = vpack.c.bf16 %v68_v6, %v67_v4  ;;  %v69_v8 = vld [vmem:[#allocation6 + $0x20] sm:$0xff]  ;;  %v70_v9 = vld [vmem:[#allocation6 + $0x28] sm:$0xff]  ;;  %v167_v12 = vld [vmem:[#allocation8 + $0x10] sm:$0xff]  ;;  %s265_s8 = sshll.u32 %s542_s7, 4  ;;  %s266_s8 = int_to_ptr.vmem [resolvable:$true] %s265_s8 }
  0x39   :  { %v165_v10 = vld [vmem:[#allocation8] sm:$0xff]  ;;  %v166_v11 = vld [vmem:[#allocation8 + $0x8] sm:$0xff]  ;;  %v168_v13 = vld [vmem:[#allocation8 + $0x18] sm:$0xff]  ;;  %v388_v14 = vpack.c.bf16 %v70_v9, %v69_v8  ;;  %p511_p11 = scmp.lt.s32.totalorder %s266_s8, %s266_s8 }
  0x3a   :  { %383 = vmatpush3.bf16.msra.mxu0 %v382_v5  ;;  %v406_v15 = vpack.c.bf16 %v166_v11, %v165_v10  ;;  %v71_v16 = vld [vmem:[#allocation6 + $0x30] sm:$0xff]  ;;  %v72_v17 = vld [vmem:[#allocation6 + $0x38] sm:$0xff]  ;;  %v409_v18 = vpack.c.bf16 %v168_v13, %v167_v12  ;;  %v169_v19 = vld [vmem:[#allocation8 + $0x20] sm:$0xff] }
  0x3b   :  { %384 = vmatprep.subr.bf16.mxu0 %v539_v0  ;;  %v170_v20 = vld [vmem:[#allocation8 + $0x28] sm:$0xff]  ;;  %v391_v21 = vpack.c.bf16 %v72_v17, %v71_v16  ;;  %v73_v22 = vld [vmem:[#allocation6 + $0x40] sm:$0xff]  ;;  %v75_v26 = vld [vmem:[#allocation6 + $0x50] sm:$0xff] }
  0x3c   :  { %407 = vmatpush3.bf16.msra.mxu1 %v406_v15  ;;  %v74_v23 = vld [vmem:[#allocation6 + $0x48] sm:$0xff]  ;;  %v412_v24 = vpack.c.bf16 %v170_v20, %v169_v19  ;;  %v76_v27 = vld [vmem:[#allocation6 + $0x58] sm:$0xff]  ;;  %v77_v29 = vld [vmem:[#allocation6 + $0x60] sm:$0xff] }
  0x3d   :  { %408 = vmatprep.subr.bf16.mxu1 %v539_v0  ;;  %v394_v25 = vpack.c.bf16 %v74_v23, %v73_v22  ;;  %v397_v28 = vpack.c.bf16 %v76_v27, %v75_v26  ;;  %v78_v30 = vld [vmem:[#allocation6 + $0x68] sm:$0xff]  ;;  %v79_v32 = vld [vmem:[#allocation6 + $0x70] sm:$0xff]  ;;  %v80_v33 = vld [vmem:[#allocation6 + $0x78] sm:$0xff] }
  0x3e   :  { %386 = vmatpush3.bf16.msra.mxu0 %v385_v7  ;;  %v400_v31 = vpack.c.bf16 %v78_v30, %v77_v29  ;;  %v403_v34 = vpack.c.bf16 %v80_v33, %v79_v32  ;;  %v64_v35 = vld [vmem:[#allocation3] sm:$0xff]  ;;  %v171_v36 = vld [vmem:[#allocation8 + $0x30] sm:$0xff]  ;;  %v173_v39 = vld [vmem:[#allocation8 + $0x40] sm:$0xff] }
  0x3f   :  { %387 = vmatprep.subr.bf16.mxu0 %v539_v0  ;;  %v172_v37 = vld [vmem:[#allocation8 + $0x38] sm:$0xff]  ;;  %v174_v40 = vld [vmem:[#allocation8 + $0x48] sm:$0xff]  ;;  %v175_v42 = vld [vmem:[#allocation8 + $0x50] sm:$0xff] }
  0x40   :  { %410 = vmatpush3.bf16.msra.mxu1 %v409_v18  ;;  %v415_v38 = vpack.c.bf16 %v172_v37, %v171_v36  ;;  %v418_v41 = vpack.c.bf16 %v174_v40, %v173_v39  ;;  %v176_v43 = vld [vmem:[#allocation8 + $0x58] sm:$0xff]  ;;  %v177_v45 = vld [vmem:[#allocation8 + $0x60] sm:$0xff]  ;;  %v178_v46 = vld [vmem:[#allocation8 + $0x68] sm:$0xff] }
  0x41   :  { %411 = vmatprep.subr.bf16.mxu1 %v539_v0  ;;  %v421_v44 = vpack.c.bf16 %v176_v43, %v175_v42  ;;  %v424_v47 = vpack.c.bf16 %v178_v46, %v177_v45  ;;  %v179_v48 = vld [vmem:[#allocation8 + $0x70] sm:$0xff]  ;;  %v180_v49 = vld [vmem:[#allocation8 + $0x78] sm:$0xff] }
  0x42   :  { %389 = vmatpush3.bf16.msra.mxu0 %v388_v14  ;;  %v427_v50 = vpack.c.bf16 %v180_v49, %v179_v48  ;;  %v275_v51 = vld [vmem:[%s651_s2] ss:$0 sm:$0xff]  ;;  %s506_s2 = scalar_lea.vmem %s266_s8, 128 }
  0x43   :  { %390 = vmatprep.subr.bf16.mxu0 %v539_v0  ;;  %v276_v60 = vld [vmem:[%s653_s4] ss:$0 sm:$0xff]  ;;  %p507_p10 = scmp.ne.s32.totalorder %s266_s8, %s506_s2  ;;  %p512_p12 = scmp.lt.s32.totalorder %s506_s2, %s506_s2 }
  0x44   :  { %413 = vmatpush3.bf16.msra.mxu1 %v412_v24 }
  0x45   :  { %414 = vmatprep.subr.bf16.mxu1 %v539_v0  ;;  %p513_p13 = por %p512_p12, %p511_p11 }
  0x46   :  { %392 = vmatpush3.bf16.msra.mxu0 %v391_v21 }
  0x47   :  { %393 = vmatprep.subr.bf16.mxu0 %v539_v0  ;;  %p514_p0 = pnand %p513_p13, %p507_p10 }
  0x48   :  { %416 = vmatpush3.bf16.msra.mxu1 %v415_v38 }
  0x49   :  { %417 = vmatprep.subr.bf16.mxu1 %v539_v0 }
  0x4a   :  { %395 = vmatpush3.bf16.msra.mxu0 %v394_v25 }
  0x4b   :  { %396 = vmatprep.subr.bf16.mxu0 %v539_v0 }
  0x4c   :  { %419 = vmatpush3.bf16.msra.mxu1 %v418_v41 }
  0x4d   :  { %420 = vmatprep.subr.bf16.mxu1 %v539_v0 }
  0x4e   :  { %398 = vmatpush3.bf16.msra.mxu0 %v397_v28 }
  0x4f   :  { %399 = vmatprep.subr.bf16.mxu0 %v539_v0 }
  0x50   :  { %422 = vmatpush3.bf16.msra.mxu1 %v421_v44 }
  0x51   :  { %423 = vmatprep.subr.bf16.mxu1 %v539_v0 }
  0x52   :  { %401 = vmatpush3.bf16.msra.mxu0 %v400_v31 }
  0x53   :  { %402 = vmatprep.subr.bf16.mxu0 %v539_v0 }
  0x54   :  { %425 = vmatpush3.bf16.msra.mxu1 %v424_v47 }
  0x55   :  { %426 = vmatprep.subr.bf16.mxu1 %v539_v0 }
  0x56   :  { %404 = vmatpush3.bf16.msra.mxu0 %v403_v34 }
  0x58   :  { %428 = vmatpush3.bf16.msra.mxu1 %v427_v50 }
  0x59   :  { %344 = vmatmul.mubr.f32.vlgmr.msra.gmra.mrb[0].mxu0 %v64_v35 }
 0x12c   :  { %v154_v52 = vpop.f32.mrb[0].mxu0 }
 0x12d   :  { %v155_v53 = vadd.f32 %v275_v51, %v154_v52  ;;  %v345_v54 = vpop.f32.mrb[1].mxu0 }
 0x12f   :  { %v159_v55 = vmul.f32 0.70710677, %v155_v53  ;;  %v158_v57 = vmul.f32 0.5, %v155_v53 }
 0x131   :  { %438 = verf.f32 %v159_v55 }
 0x13b   :  { %v439_v56 = vpop.eup %438 }
 0x13c   :  { %v161_v58 = vadd.f32 1.0, %v439_v56 }
 0x13e   :  { %v162_v59 = vmul.f32 %v161_v58, %v158_v57 }
 0x140   :  { %379 = vmatmul.mubr.f32.vlgmr.msra.gmra.mrb[0].mxu1 %v162_v59 }
 0x213   :  { %v254_v61 = vpop.f32.mrb[0].mxu1 }
 0x214   :  { %v255_v62 = vadd.f32 %v276_v60, %v254_v61  ;;  %v380_v63 = vpop.f32.mrb[1].mxu1 }
 0x216   :  { %258 = vst [vmem:[#allocation9] sm:$0xff] %v255_v62 }
 0x217   :  { %517 = shalt.err (!%p514_p0)
}
 0x218   :  { %s518_s11 = scalar_lea.hbm %s654_s5, 128 }
 0x219   :  { %p519_p1 = scmp.ne.s32.totalorder %s654_s5, %s518_s11  ;;  %p522_p2 = scmp.lt.u32.totalorder %s518_s11, %s654_s5 }
 0x21b   :  { %p524_p3 = pnand %p522_p2, %p519_p1 }
 0x21d   :  { %527 = shalt.err (!%p524_p3)
}
 0x21e   :  { %268 = dma.vmem_to_hbm [thread:$0]  %s266_s8, 128, %s654_s5, [#allocation5]  }
 0x21f   :  { %532 = dma.done.wait [#allocation5], 128  }
 0x220   :  { %533 = vsyncadd [#allocation5], 4294967168 }
 0x221   :  { %272 = vsyncpa [#allocation4], 1 }
 0x222   :  { %273 = vsyncpa [#allocation7], 1 }
 0x223   :  { %274 = vsyncpa [#allocation5], 1 }

</bundles_post_ra>
